<compile_context>
chip_gen: v7x
topology: tpu7x:2x2x1
jax: 0.10.0
libtpu: 0.0.40
codegen_flags: <defaults>
</compile_context>

<pallas_src>
import functools

import jax
import jax.numpy as jnp
import numpy as np
from jax import lax
from jax.experimental import pallas as pl
from jax.experimental.pallas import tpu as pltpu


def _round_up(x, m):
    return ((x + m - 1) // m) * m


# ----------------------------------------------------------------------------
# Kernel A: fused embedding gather + 2-layer tanh MLP
#   out[i, j] = tanh(onehot(ids_i) @ table @ W1 + b1) @ W2[:, j] + b2[j]
# ----------------------------------------------------------------------------
def _fused_prefix_mlp_kernel(ids_ref, table_ref, w1_ref, b1_ref, w2_ref,
                             b2_ref, o_ref, h_ref):
    # j (out_dim tile) is the innermost grid axis.  The gather, first matmul
    # and tanh are identical for every j tile of this row block, so compute
    # them once at j == 0 and keep the hidden activations in VMEM scratch.
    @pl.when(pl.program_id(1) == 0)
    def _():
        ids = ids_ref[...]                                    # (tm, 1) int32
        tm = ids_ref.shape[0]
        n_tok = table_ref.shape[0]
        onehot = (ids == lax.broadcasted_iota(jnp.int32, (tm, n_tok), 1)
                  ).astype(jnp.float32)
        x = jnp.dot(onehot, table_ref[...],
                    preferred_element_type=jnp.float32)       # (tm, H) gather
        h = jnp.dot(x, w1_ref[...], preferred_element_type=jnp.float32)
        h_ref[...] = jnp.tanh(h + b1_ref[...])                # (tm, P)

    o = jnp.dot(h_ref[...], w2_ref[...], preferred_element_type=jnp.float32)
    o_ref[...] = (o + b2_ref[...]).astype(o_ref.dtype)


@functools.partial(jax.jit, static_argnames=("tm", "tn", "out_dtype"))
def prefix_mlp_fused(ids_flat, table, w1, b1, w2, b2, *,
                     tm=256, tn=2048, out_dtype=jnp.float32):
    """tanh(table[ids] @ w1 + b1) @ w2 + b2, fully fused in one pallas_call."""
    M = ids_flat.shape[0]
    n_tok, H = table.shape
    P = w1.shape[1]
    N = w2.shape[1]

    # Clamp/align tiles; pad rows and output columns to tile multiples.
    tm = min(tm, _round_up(M, 8))
    tn = min(tn, _round_up(N, 128))
    Mp = _round_up(M, tm)
    Np = _round_up(N, tn)
    # Pad contraction dims once so the MXU sees aligned tiles at real sizes
    # (e.g. prefix_hidden_size 500 -> 512).  Zero padding is exact.
    Tp = _round_up(n_tok, 8)
    Hp = _round_up(H, 128)
    Pp = _round_up(P, 128)

    ids2d = jnp.zeros((Mp, 1), jnp.int32).at[:M, 0].set(
        ids_flat.astype(jnp.int32))
    tablep = jnp.pad(table, ((0, Tp - n_tok), (0, Hp - H)))
    w1p = jnp.pad(w1, ((0, Hp - H), (0, Pp - P)))
    b1p = jnp.pad(b1, ((0, 0), (0, Pp - P)))
    w2p = jnp.pad(w2, ((0, Pp - P), (0, Np - N)))
    b2p = jnp.pad(b2, ((0, 0), (0, Np - N)))

    grid = (Mp // tm, Np // tn)
    out = pl.pallas_call(
        _fused_prefix_mlp_kernel,
        out_shape=jax.ShapeDtypeStruct((Mp, Np), out_dtype),
        grid_spec=pltpu.PrefetchScalarGridSpec(
            num_scalar_prefetch=0,
            grid=grid,
            in_specs=[
                pl.BlockSpec((tm, 1), lambda i, j: (i, 0)),        # ids
                pl.BlockSpec((Tp, Hp), lambda i, j: (0, 0)),       # emb table
                pl.BlockSpec((Hp, Pp), lambda i, j: (0, 0)),       # w1
                pl.BlockSpec((1, Pp), lambda i, j: (0, 0)),        # b1
                pl.BlockSpec((Pp, tn), lambda i, j: (0, j)),       # w2 strip
                pl.BlockSpec((1, tn), lambda i, j: (0, j)),        # b2 strip
            ],
            out_specs=pl.BlockSpec((tm, tn), lambda i, j: (i, j)),
            scratch_shapes=[pltpu.VMEM((tm, Pp), jnp.float32)],    # hidden act
        ),
        compiler_params=pltpu.CompilerParams(
            dimension_semantics=("parallel", "arbitrary")),
    )(ids2d, tablep, w1p, b1p, w2p, b2p)
    return out[:M, :N]


# ----------------------------------------------------------------------------
# Kernel B: tiled embedding gather (prefix_projection=False path)
#   out block (tm, tn) = onehot(ids block) @ table[:, j*tn:(j+1)*tn]
# ----------------------------------------------------------------------------
def _gather_kernel(ids_ref, table_ref, o_ref):
    ids = ids_ref[...]                                        # (tm, 1) int32
    tm = ids_ref.shape[0]
    n_tok = table_ref.shape[0]
    onehot = (ids == lax.broadcasted_iota(jnp.int32, (tm, n_tok), 1)
              ).astype(jnp.float32)
    o_ref[...] = jnp.dot(onehot, table_ref[...],
                         preferred_element_type=jnp.float32).astype(o_ref.dtype)


@functools.partial(jax.jit, static_argnames=("tm", "tn", "out_dtype"))
def embedding_lookup(ids_flat, table, *, tm=256, tn=2048, out_dtype=None):
    """Gather table[ids_flat] with lane-dense (tm, tn) output blocks."""
    if out_dtype is None:
        out_dtype = table.dtype
    M = ids_flat.shape[0]
    n_tok, N = table.shape

    tm = min(tm, _round_up(M, 8))
    tn = min(tn, _round_up(N, 128))
    Mp = _round_up(M, tm)
    Np = _round_up(N, tn)
    Tp = _round_up(n_tok, 8)

    ids2d = jnp.zeros((Mp, 1), jnp.int32).at[:M, 0].set(
        ids_flat.astype(jnp.int32))
    tablep = jnp.pad(table, ((0, Tp - n_tok), (0, Np - N)))

    grid = (Mp // tm, Np // tn)
    out = pl.pallas_call(
        _gather_kernel,
        out_shape=jax.ShapeDtypeStruct((Mp, Np), out_dtype),
        grid_spec=pltpu.PrefetchScalarGridSpec(
            num_scalar_prefetch=0,
            grid=grid,
            in_specs=[
                pl.BlockSpec((tm, 1), lambda i, j: (i, 0)),        # ids
                pl.BlockSpec((Tp, tn), lambda i, j: (0, j)),       # table strip
            ],
            out_specs=pl.BlockSpec((tm, tn), lambda i, j: (i, j)),
        ),
        compiler_params=pltpu.CompilerParams(
            dimension_semantics=("parallel", "parallel")),
    )(ids2d, tablep)
    return out[:M, :N]


# ----------------------------------------------------------------------------
# PrefixEncoder wrapper (parameters initialized deterministically in-script).
# ----------------------------------------------------------------------------
class PrefixEncoderPallas:
    def __init__(self, num_tokens, hidden_size, num_hidden_layers,
                 prefix_projection, prefix_hidden_size, key,
                 out_dtype=jnp.float32):
        self.prefix_projection = prefix_projection
        self.out_dtype = out_dtype
        out_dim = num_hidden_layers * 2 * hidden_size
        k0, k1, k2, k3, k4 = jax.random.split(key, 5)
        if prefix_projection:
            self.embedding = jax.random.normal(
                k0, (num_tokens, hidden_size), jnp.float32) * 0.02
            # Linear weights stored as (in, out); equivalent to torch (out,in)^T.
            self.w1 = jax.random.normal(
                k1, (hidden_size, prefix_hidden_size), jnp.float32) * 0.02
            self.b1 = jax.random.normal(
                k2, (1, prefix_hidden_size), jnp.float32) * 0.02
            self.w2 = jax.random.normal(
                k3, (prefix_hidden_size, out_dim), jnp.float32) * 0.02
            self.b2 = jax.random.normal(k4, (1, out_dim), jnp.float32) * 0.02
        else:
            self.embedding = jax.random.normal(
                k0, (num_tokens, out_dim), jnp.float32) * 0.02
        self.out_dim = out_dim

    def __call__(self, prefix):
        # prefix: (batch, prefix_len) int32
        B, L = prefix.shape
        ids_flat = prefix.reshape(B * L).astype(jnp.int32)
        if self.prefix_projection:
            pkv = prefix_mlp_fused(ids_flat, self.embedding, self.w1, self.b1,
                                   self.w2, self.b2, out_dtype=self.out_dtype)
        else:
            pkv = embedding_lookup(ids_flat, self.embedding,
                                   out_dtype=self.out_dtype)
        return pkv.reshape(B, L, self.out_dim)

    # Plain-JAX reference for validation.
    def reference(self, prefix):
        x = self.embedding[prefix]
        if self.prefix_projection:
            x = jnp.tanh(x @ self.w1 + self.b1[0]) @ self.w2 + self.b2[0]
        return x


if __name__ == "__main__":
    batch, prefix_len = 2, 8
    num_tokens = 16
    hidden_size = 32
    num_hidden_layers = 2
    prefix_hidden_size = 64   # stand-in for the module default of 500 at small scale

    key = jax.random.PRNGKey(0)
    k_tok, k_params_a, k_params_b = jax.random.split(key, 3)

    prefix = jax.random.randint(k_tok, (batch, prefix_len), 0, num_tokens,
                                dtype=jnp.int32)

    # Projection path (embedding -> Linear -> tanh -> Linear), fully fused.
    enc_proj = PrefixEncoderPallas(num_tokens, hidden_size, num_hidden_layers,
                                   prefix_projection=True,
                                   prefix_hidden_size=prefix_hidden_size,
                                   key=k_params_a)
    out_proj = jax.block_until_ready(enc_proj(prefix))
    ref_proj = enc_proj.reference(prefix)
    assert out_proj.shape == (batch, prefix_len, 2 * num_hidden_layers * hidden_size)
    assert np.allclose(np.asarray(out_proj), np.asarray(ref_proj), atol=1e-5)

    # Plain-embedding path (prefix_projection=False).
    enc_emb = PrefixEncoderPallas(num_tokens, hidden_size, num_hidden_layers,
                                  prefix_projection=False,
                                  prefix_hidden_size=prefix_hidden_size,
                                  key=k_params_b)
    out_emb = jax.block_until_ready(enc_emb(prefix))
    ref_emb = enc_emb.reference(prefix)
    assert out_emb.shape == (batch, prefix_len, 2 * num_hidden_layers * hidden_size)
    assert np.allclose(np.asarray(out_emb), np.asarray(ref_emb), atol=1e-5)

    print("KERNEL_OK")
</pallas_src>

<mosaic_0001>
module attributes {stable_mosaic.version = 11 : i64} {
  func.func @_fused_prefix_mlp_kernel(%arg0: i32, %arg1: i32, %arg2: memref<16x1xi32, #tpu.memory_space<vmem>>, %arg3: memref<16x128xf32, #tpu.memory_space<vmem>>, %arg4: memref<128x128xf32, #tpu.memory_space<vmem>>, %arg5: memref<1x128xf32, #tpu.memory_space<vmem>>, %arg6: memref<128x128xf32, #tpu.memory_space<vmem>>, %arg7: memref<1x128xf32, #tpu.memory_space<vmem>>, %arg8: memref<16x128xf32, #tpu.memory_space<vmem>>, %arg9: memref<16x128xf32, #tpu.memory_space<vmem>>) attributes {dimension_semantics = [#tpu.dimension_semantics<parallel>, #tpu.dimension_semantics<arbitrary>], iteration_bounds = array<i64: 1, 1>, scalar_prefetch = 0 : i64, scratch_operands = 1 : i64, tpu.core_type = #tpu.core_type<tc>, window_params = [{transform_indices = @transform_0, window_bounds = array<i64: 16, 1>}, {pipeline_mode = #tpu.pipeline_mode<synchronous>, transform_indices = @transform_1, window_bounds = array<i64: 16, 128>}, {pipeline_mode = #tpu.pipeline_mode<synchronous>, transform_indices = @transform_2, window_bounds = array<i64: 128, 128>}, {pipeline_mode = #tpu.pipeline_mode<synchronous>, transform_indices = @transform_3, window_bounds = array<i64: 1, 128>}, {transform_indices = @transform_4, window_bounds = array<i64: 128, 128>}, {transform_indices = @transform_5, window_bounds = array<i64: 1, 128>}, {transform_indices = @transform_6, window_bounds = array<i64: 16, 128>}]} {
    %c0_i32 = arith.constant 0 : i32
    %0 = arith.cmpi eq, %arg1, %c0_i32 : i32
    %1 = arith.extui %0 : i1 to i32
    %c0_i32_0 = arith.constant 0 : i32
    %2 = arith.cmpi ne, %1, %c0_i32_0 : i32
    scf.if %2 {
      %c0_8 = arith.constant 0 : index
      %c0_9 = arith.constant 0 : index
      %10 = vector.load %arg2[%c0_8, %c0_9] : memref<16x1xi32, #tpu.memory_space<vmem>>, vector<16x1xi32>
      %11 = tpu.iota {dimensions = array<i32: 1>} : vector<16x16xi32>
      %12 = vector.broadcast %10 : vector<16x1xi32> to vector<16x16xi32>
      %13 = arith.cmpi eq, %12, %11 : vector<16x16xi32>
      %14 = arith.extui %13 : vector<16x16xi1> to vector<16x16xi32>
      %15 = arith.sitofp %14 : vector<16x16xi32> to vector<16x16xf32>
      %c0_10 = arith.constant 0 : index
      %c0_11 = arith.constant 0 : index
      %16 = vector.load %arg3[%c0_10, %c0_11] : memref<16x128xf32, #tpu.memory_space<vmem>>, vector<16x128xf32>
      %cst_12 = arith.constant dense<0.000000e+00> : vector<16x128xf32>
      %17 = tpu.matmul %15, %16, %cst_12 {dimension_numbers = #tpu.dot_dimension_numbers<[1], [0], [0], [1], [0, 0, 1, 1], [], []>} : vector<16x16xf32>, vector<16x128xf32>, vector<16x128xf32> -> vector<16x128xf32>
      %c0_13 = arith.constant 0 : index
      %c0_14 = arith.constant 0 : index
      %18 = vector.load %arg4[%c0_13, %c0_14] : memref<128x128xf32, #tpu.memory_space<vmem>>, vector<128x128xf32>
      %cst_15 = arith.constant dense<0.000000e+00> : vector<16x128xf32>
      %19 = tpu.matmul %17, %18, %cst_15 {dimension_numbers = #tpu.dot_dimension_numbers<[1], [0], [0], [1], [0, 0, 1, 1], [], []>} : vector<16x128xf32>, vector<128x128xf32>, vector<16x128xf32> -> vector<16x128xf32>
      %c0_16 = arith.constant 0 : index
      %c0_17 = arith.constant 0 : index
      %20 = vector.load %arg5[%c0_16, %c0_17] : memref<1x128xf32, #tpu.memory_space<vmem>>, vector<1x128xf32>
      %21 = vector.broadcast %20 : vector<1x128xf32> to vector<16x128xf32>
      %22 = arith.addf %19, %21 : vector<16x128xf32>
      %23 = math.tanh %22 : vector<16x128xf32>
      %c0_18 = arith.constant 0 : index
      %c0_19 = arith.constant 0 : index
      %24 = vector.load %arg9[%c0_18, %c0_19] : memref<16x128xf32, #tpu.memory_space<vmem>>, vector<16x128xf32>
      tpu.vector_store %arg9[%c0_18, %c0_19], %23 {strides = array<i32>} : memref<16x128xf32, #tpu.memory_space<vmem>>, vector<16x128xf32>,
    } else {
    }
    %c0 = arith.constant 0 : index
    %c0_1 = arith.constant 0 : index
    %3 = vector.load %arg9[%c0, %c0_1] : memref<16x128xf32, #tpu.memory_space<vmem>>, vector<16x128xf32>
    %c0_2 = arith.constant 0 : index
    %c0_3 = arith.constant 0 : index
    %4 = vector.load %arg6[%c0_2, %c0_3] : memref<128x128xf32, #tpu.memory_space<vmem>>, vector<128x128xf32>
    %cst = arith.constant dense<0.000000e+00> : vector<16x128xf32>
    %5 = tpu.matmul %3, %4, %cst {dimension_numbers = #tpu.dot_dimension_numbers<[1], [0], [0], [1], [0, 0, 1, 1], [], []>} : vector<16x128xf32>, vector<128x128xf32>, vector<16x128xf32> -> vector<16x128xf32>
    %c0_4 = arith.constant 0 : index
    %c0_5 = arith.constant 0 : index
    %6 = vector.load %arg7[%c0_4, %c0_5] : memref<1x128xf32, #tpu.memory_space<vmem>>, vector<1x128xf32>
    %7 = vector.broadcast %6 : vector<1x128xf32> to vector<16x128xf32>
    %8 = arith.addf %5, %7 : vector<16x128xf32>
    %c0_6 = arith.constant 0 : index
    %c0_7 = arith.constant 0 : index
    %9 = vector.load %arg8[%c0_6, %c0_7] : memref<16x128xf32, #tpu.memory_space<vmem>>, vector<16x128xf32>
    tpu.vector_store %arg8[%c0_6, %c0_7], %8 {strides = array<i32>} : memref<16x128xf32, #tpu.memory_space<vmem>>, vector<16x128xf32>,
    return
  }
  func.func @transform_0(%arg0: i32, %arg1: i32) -> (i32, i32) {
    %c0_i32 = arith.constant 0 : i32
    %c0_i32_0 = arith.constant 0 : i32
    return %arg0, %c0_i32 : i32, i32
  }
  func.func @transform_1(%arg0: i32, %arg1: i32) -> (i32, i32) {
    %c0_i32 = arith.constant 0 : i32
    %c0_i32_0 = arith.constant 0 : i32
    %c0_i32_1 = arith.constant 0 : i32
    return %c0_i32, %c0_i32_0 : i32, i32
  }
  func.func @transform_2(%arg0: i32, %arg1: i32) -> (i32, i32) {
    %c0_i32 = arith.constant 0 : i32
    %c0_i32_0 = arith.constant 0 : i32
    %c0_i32_1 = arith.constant 0 : i32
    return %c0_i32, %c0_i32_0 : i32, i32
  }
  func.func @transform_3(%arg0: i32, %arg1: i32) -> (i32, i32) {
    %c0_i32 = arith.constant 0 : i32
    %c0_i32_0 = arith.constant 0 : i32
    %c0_i32_1 = arith.constant 0 : i32
    return %c0_i32, %c0_i32_0 : i32, i32
  }
  func.func @transform_4(%arg0: i32, %arg1: i32) -> (i32, i32) {
    %c0_i32 = arith.constant 0 : i32
    %c0_i32_0 = arith.constant 0 : i32
    return %c0_i32, %arg1 : i32, i32
  }
  func.func @transform_5(%arg0: i32, %arg1: i32) -> (i32, i32) {
    %c0_i32 = arith.constant 0 : i32
    %c0_i32_0 = arith.constant 0 : i32
    return %c0_i32, %arg1 : i32, i32
  }
  func.func @transform_6(%arg0: i32, %arg1: i32) -> (i32, i32) {
    %c0_i32 = arith.constant 0 : i32
    return %arg0, %arg1 : i32, i32
  }
}

</mosaic_0001>

<bundles_post_ra>
// kernel: prefix_mlp_fused.1
= control target key start
LH: loop header
LB: loop body
LE: loop exit
PB: predicated region body
PF: predicated region fallthrough
CT: control target
= control target key end

     0   :  { %s739_s0 = inlined_call_operand.vmem [shape: s32[16,1], index: 0, kind: input, shape index: {}]   ;;  %s740_s1 = inlined_call_operand.vmem [shape: f32[16,128], index: 1, kind: input, shape index: {}]   ;;  %s741_s2 = inlined_call_operand.vmem [shape: f32[128,128], index: 2, kind: input, shape index: {}]   ;;  %s742_s3 = inlined_call_operand.vmem [shape: f32[1,128], index: 3, kind: input, shape index: {}]   ;;  %s743_s4 = inlined_call_operand.vmem [shape: f32[128,128], index: 4, kind: input, shape index: {}]   ;;  %s744_s5 = inlined_call_operand.vmem [shape: f32[1,128], index: 5, kind: input, shape index: {}]   ;;  %s745_s6 = inlined_call_operand.hbm [shape: f32[16,128], index: 6, kind: output, shape index: {}]  }
   0x1   :  { %v28_v0 = vld [vmem:[%s739_s0] sm:$0xff] }
   0x2   :  { %11 = vsyncpa [#allocation4], 0  ;;  %v573_v1 = vmov 0   ;;  %v44_v2 = vld [vmem:[%s740_s1] sm:$0xff]  ;;  %v45_v3 = vld [vmem:[%s740_s1 + $0x8] sm:$0xff]  ;;  %v30_v30 = vlaneseq  ;;  %vm46_vm0 = vcmask 130048  }
   0x3   :  { %544 = vset.pattern.permute.xlu0 %v573_v1  ;;  %v471_v4 = vpack.c.bf16 %v45_v3, %v44_v2  ;;  %v29_v5 = vld [vmem:[%s739_s0 + $0x8] sm:$0xff]  ;;  %v128_v6 = vld [vmem:[%s741_s2] sm:$0xff]  ;;  %v130_v8 = vld [vmem:[%s741_s2 + $0x10] sm:$0xff]  ;;  %v574_v33 = vmov 0.0   ;;  %s575_s16 = smov [#allocation3]  }
   0x4   :  { %33 = vperm.xlu0 %544, %v28_v0   ;;  %v129_v7 = vld [vmem:[%s741_s2 + $0x8] sm:$0xff]  ;;  %v131_v10 = vld [vmem:[%s741_s2 + $0x18] sm:$0xff]  ;;  %v132_v12 = vld [vmem:[%s741_s2 + $0x20] sm:$0xff]  ;;  %v31_v31 = vand.u32 127, %v30_v30  ;;  %s337_s17 = sshll.u32 %s575_s16, 4  ;;  %s338_s17 = int_to_ptr.vmem [resolvable:$true] %s337_s17 }
   0x5   :  { %472 = vmatprep.subr.bf16.mxu0 %v471_v4  ;;  %v475_v9 = vpack.c.bf16 %v129_v7, %v128_v6  ;;  %v479_v11 = vpack.c.bf16 %v131_v10, %v130_v8  ;;  %v133_v13 = vld [vmem:[%s741_s2 + $0x28] sm:$0xff]  ;;  %v134_v15 = vld [vmem:[%s741_s2 + $0x30] sm:$0xff]  ;;  %v135_v16 = vld [vmem:[%s741_s2 + $0x38] sm:$0xff]  ;;  %p554_p1 = scmp.lt.s32.totalorder %s338_s17, %s338_s17 }
   0x6   :  { %474 = vmatpush3.bf16.msra.mxu0 %v471_v4  ;;  %v483_v14 = vpack.c.bf16 %v133_v13, %v132_v12  ;;  %v487_v17 = vpack.c.bf16 %v135_v16, %v134_v15  ;;  %v136_v18 = vld [vmem:[%s741_s2 + $0x40] sm:$0xff]  ;;  %v137_v19 = vld [vmem:[%s741_s2 + $0x48] sm:$0xff]  ;;  %v138_v21 = vld [vmem:[%s741_s2 + $0x50] sm:$0xff] }
   0x7   :  { %476 = vmatprep.subr.bf16.mxu1 %v475_v9  ;;  %v491_v20 = vpack.c.bf16 %v137_v19, %v136_v18  ;;  %v139_v22 = vld [vmem:[%s741_s2 + $0x58] sm:$0xff]  ;;  %v140_v24 = vld [vmem:[%s741_s2 + $0x60] sm:$0xff]  ;;  %v141_v25 = vld [vmem:[%s741_s2 + $0x68] sm:$0xff] }
   0x8   :  { %36 = vperm.xlu0 %544, %v29_v5   ;;  %478 = vmatpush3.bf16.msra.mxu1 %v475_v9  ;;  %v495_v23 = vpack.c.bf16 %v139_v22, %v138_v21  ;;  %v499_v26 = vpack.c.bf16 %v141_v25, %v140_v24  ;;  %v142_v27 = vld [vmem:[%s741_s2 + $0x70] sm:$0xff]  ;;  %v143_v28 = vld [vmem:[%s741_s2 + $0x78] sm:$0xff]  ;;  %v232_v37 = vld [vmem:[%s743_s4] sm:$0xff] }
   0x9   :  { %480 = vmatprep.subr.bf16.mxu1 %v479_v11  ;;  %v503_v29 = vpack.c.bf16 %v143_v28, %v142_v27  ;;  %v233_v38 = vld [vmem:[%s743_s4 + $0x8] sm:$0xff]  ;;  %v234_v39 = vld [vmem:[%s743_s4 + $0x10] sm:$0xff]  ;;  %v235_v41 = vld [vmem:[%s743_s4 + $0x18] sm:$0xff] }
   0xa   :  { %v507_v40 = vpack.c.bf16 %v233_v38, %v232_v37  ;;  %v511_v42 = vpack.c.bf16 %v235_v41, %v234_v39  ;;  %v236_v43 = vld [vmem:[%s743_s4 + $0x20] sm:$0xff]  ;;  %v237_v44 = vld [vmem:[%s743_s4 + $0x28] sm:$0xff]  ;;  %v238_v46 = vld [vmem:[%s743_s4 + $0x30] sm:$0xff] }
   0xb   :  { %v515_v45 = vpack.c.bf16 %v237_v44, %v236_v43  ;;  %v239_v47 = vld [vmem:[%s743_s4 + $0x38] sm:$0xff]  ;;  %v240_v51 = vld [vmem:[%s743_s4 + $0x40] sm:$0xff]  ;;  %v241_v52 = vld [vmem:[%s743_s4 + $0x48] sm:$0xff] }
   0xc   :  { %482 = vmatpush3.bf16.msra.mxu1 %v479_v11  ;;  %508 = vmatprep.subr.bf16.mxu0 %v507_v40  ;;  %v519_v48 = vpack.c.bf16 %v239_v47, %v238_v46  ;;  %v523_v53 = vpack.c.bf16 %v241_v52, %v240_v51  ;;  %v242_v54 = vld [vmem:[%s743_s4 + $0x50] sm:$0xff]  ;;  %v243_v55 = vld [vmem:[%s743_s4 + $0x58] sm:$0xff]  ;;  %v244_v57 = vld [vmem:[%s743_s4 + $0x60] sm:$0xff] }
   0xd   :  { %484 = vmatprep.subr.bf16.mxu1 %v483_v14  ;;  %v527_v56 = vpack.c.bf16 %v243_v55, %v242_v54  ;;  %v245_v58 = vld [vmem:[%s743_s4 + $0x68] sm:$0xff]  ;;  %v246_v59 = vld [vmem:[%s743_s4 + $0x70] sm:$0xff]  ;;  %v247_v61 = vld [vmem:[%s743_s4 + $0x78] sm:$0xff] }
   0xe   :  { %v531_v60 = vpack.c.bf16 %v245_v58, %v244_v57  ;;  %v535_v62 = vpack.c.bf16 %v247_v61, %v246_v59  ;;  %v352_v63 = vld [vmem:[%s742_s3] ss:$0 sm:$0xff]  ;;  %s549_s3 = scalar_lea.vmem %s338_s17, 256 }
   0xf   :  { %v353_v6 = vld [vmem:[%s744_s5] ss:$0 sm:$0xff]  ;;  %p550_p0 = scmp.ne.s32.totalorder %s338_s17, %s549_s3  ;;  %p555_p2 = scmp.lt.s32.totalorder %s549_s3, %s549_s3 }
  0x10   :  { %486 = vmatpush3.bf16.msra.mxu1 %v483_v14 }
  0x11   :  { %488 = vmatprep.subr.bf16.mxu1 %v487_v17  ;;  %p556_p3 = por %p555_p2, %p554_p1 }
  0x13   :  { %p557_p4 = pnand %p556_p3, %p550_p0 }
  0x14   :  { %490 = vmatpush3.bf16.msra.mxu1 %v487_v17 }
  0x15   :  { %492 = vmatprep.subr.bf16.mxu1 %v491_v20 }
  0x18   :  { %494 = vmatpush3.bf16.msra.mxu1 %v491_v20 }
  0x19   :  { %496 = vmatprep.subr.bf16.mxu1 %v495_v23 }
  0x1c   :  { %498 = vmatpush3.bf16.msra.mxu1 %v495_v23 }
  0x1d   :  { %500 = vmatprep.subr.bf16.mxu1 %v499_v26 }
  0x20   :  { %502 = vmatpush3.bf16.msra.mxu1 %v499_v26 }
  0x21   :  { %504 = vmatprep.subr.bf16.mxu1 %v503_v29 }
  0x24   :  { %506 = vmatpush3.bf16.msra.mxu1 %v503_v29 }
  0x83   :  { %v34_v32 = vpop.permute.xlu0 %33 }
  0x84   :  { %vm38_vm1 = vcmp.eq.s32.totalorder %v34_v32, %v31_v31 }
  0x85   :  { %v348_v34 = vsel %vm38_vm1, 1.0, %v574_v33 }
  0x86   :  { %398 = vmatprep.mubr.msk.f32.mxu0 %vm46_vm0, %v348_v34 }
  0x87   :  { %v37_v35 = vpop.permute.xlu0 %36 }
  0x88   :  { %vm39_vm2 = vcmp.eq.s32.totalorder %v37_v35, %v31_v31 }
  0x89   :  { %v349_v36 = vsel %vm39_vm2, 1.0, %v574_v33 }
  0x8a   :  { %399 = vmatmul.mubr.msk.f32.vlgmr.msra.gmra.mrb[0].mxu0 %vm46_vm0, %v349_v36 }
  0x8b   :  { %510 = vmatpush3.bf16.msra.mxu0 %v507_v40 }
  0x8c   :  { %512 = vmatprep.subr.bf16.mxu0 %v511_v42 }
  0x8f   :  { %514 = vmatpush3.bf16.msra.mxu0 %v511_v42 }
  0x90   :  { %516 = vmatprep.subr.bf16.mxu0 %v515_v45 }
  0x93   :  { %518 = vmatpush3.bf16.msra.mxu0 %v515_v45 }
  0x94   :  { %520 = vmatprep.subr.bf16.mxu0 %v519_v48 }
  0x97   :  { %522 = vmatpush3.bf16.msra.mxu0 %v519_v48 }
  0x98   :  { %524 = vmatprep.subr.bf16.mxu0 %v523_v53 }
  0x9b   :  { %526 = vmatpush3.bf16.msra.mxu0 %v523_v53 }
  0x9c   :  { %528 = vmatprep.subr.bf16.mxu0 %v527_v56 }
  0x9f   :  { %530 = vmatpush3.bf16.msra.mxu0 %v527_v56 }
  0xa0   :  { %532 = vmatprep.subr.bf16.mxu0 %v531_v60 }
  0xa3   :  { %534 = vmatpush3.bf16.msra.mxu0 %v531_v60 }
  0xa4   :  { %536 = vmatprep.subr.bf16.mxu0 %v535_v62 }
  0xa7   :  { %538 = vmatpush3.bf16.msra.mxu0 %v535_v62 }
 0x15d   :  { %v400_v49 = vpop.f32.mrb[0].mxu0 }
 0x15e   :  { %v119_v50 = vpop.f32.mrb[1].mxu0 }
 0x15f   :  { %433 = vmatprep.mubr.f32.mxu1 %v119_v50 }
 0x160   :  { %434 = vmatmul.mubr.f32.vlgmr.msra.gmra.mrb[0].mxu1 %v400_v49 }
 0x233   :  { %v435_v0 = vpop.f32.mrb[0].mxu1 }
 0x234   :  { %v223_v1 = vadd.f32 %v435_v0, %v352_v63  ;;  %v217_v2 = vpop.f32.mrb[1].mxu1 }
 0x235   :  { %v218_v3 = vadd.f32 %v352_v63, %v217_v2 }
 0x237   :  { %545 = vtanh.f32 %v218_v3 }
 0x238   :  { %547 = vtanh.f32 %v223_v1 }
 0x241   :  { %v546_v4 = vpop.eup %545 }
 0x242   :  { %v548_v5 = vpop.eup %547  ;;  %468 = vmatprep.mubr.f32.mxu0 %v546_v4 }
 0x243   :  { %469 = vmatmul.mubr.f32.vlgmr.msra.gmra.mrb[2].mxu0 %v548_v5 }
 0x316   :  { %v470_v7 = vpop.f32.mrb[2].mxu0 }
 0x317   :  { %v327_v8 = vadd.f32 %v470_v7, %v353_v6  ;;  %v321_v9 = vpop.f32.mrb[3].mxu0 }
 0x318   :  { %v322_v10 = vadd.f32 %v353_v6, %v321_v9 }
 0x319   :  { %331 = vst [vmem:[#allocation3 + $0x8] sm:$0xff] %v327_v8 }
 0x31a   :  { %330 = vst [vmem:[#allocation3] sm:$0xff] %v322_v10 }
 0x31b   :  { %560 = shalt.err (!%p557_p4)
}
 0x31c   :  { %s561_s5 = scalar_lea.hbm %s745_s6, 256 }
 0x31d   :  { %p562_p5 = scmp.ne.s32.totalorder %s745_s6, %s561_s5  ;;  %p565_p6 = scmp.lt.u32.totalorder %s561_s5, %s745_s6 }
 0x31f   :  { %p567_p7 = pnand %p565_p6, %p562_p5 }
 0x321   :  { %570 = shalt.err (!%p567_p7)
}
 0x322   :  { %s576_s24 = smov 128   ;;  %s577_s25 = smov 8  }
 0x323   :  { %343 = dma.vmem_to_hbm [thread:$0]  %s338_s17, 256, %s745_s6, [#allocation4], %s576_s24, %s576_s24, %s577_s25  }
 0x324   :  { %571 = dma.done.wait [#allocation4], 256  }
 0x325   :  { %572 = vsyncadd [#allocation4], 4294967040 }
 0x326   :  { %347 = vsyncpa [#allocation4], 1 }

</bundles_post_ra>
